<compile_context>
chip_gen: v5e
topology: v5e:2x2
jax: 0.10.0
libtpu: 0.0.40
codegen_flags: <defaults>
</compile_context>

<pallas_src>
import functools

import jax
import jax.numpy as jnp
from jax.experimental import pallas as pl
from jax.experimental.pallas import tpu as pltpu

_LANE = 128
_SUBLANE = 8
_VMEM = pl.BlockSpec(memory_space=pltpu.MemorySpace.VMEM)


# ------------------------------ fused kernel -------------------------------

def _fused_gin_kernel(x_ref, adj_ref, pool_ref,
                      ew_ref, eb_ref,
                      gw1_ref, gb1_ref, gw2_ref, gb2_ref,
                      tw_ref, tb_ref,
                      out_ref, *, num_gin, num_task):
    bf16 = jnp.bfloat16

    # NodeFeatEmbed: single plain Linear. bf16 MXU operands, f32 accumulate,
    # f32 bias add (elementwise stays f32 -> no bf16 VPU cost on v5e).
    h = jnp.dot(x_ref[...], ew_ref[...], preferred_element_type=jnp.float32)
    h = h + eb_ref[...]

    # Adjacency with (1+eps)*I already folded into the diagonal; loaded once and
    # reused by every GIN layer (VMEM resident, bf16).
    adj = adj_ref[...]

    # GIN stack, statically unrolled; all weights stay resident in VMEM.
    for l in range(num_gin):
        # z = (1+eps)*h + sum_{j->i} h[j]  ==  A_hat @ h  (single MXU matmul)
        z = jnp.dot(adj, h.astype(bf16), preferred_element_type=jnp.float32)
        t = jnp.dot(z.astype(bf16), gw1_ref[l], preferred_element_type=jnp.float32)
        t = jnp.maximum(t + gb1_ref[pl.ds(l, 1), :], 0.0)
        h = jnp.dot(t.astype(bf16), gw2_ref[l], preferred_element_type=jnp.float32)
        h = h + gb2_ref[pl.ds(l, 1), :]
        if l < num_gin - 1:            # ReLU between convs, none after the last
            h = jnp.maximum(h, 0.0)

    # readout = global_add_pool: P[g, i] = 1 iff node i belongs to graph g
    g = jnp.dot(pool_ref[...], h.astype(bf16), preferred_element_type=jnp.float32)

    # TaskLayer MLP (ReLU on hidden layers, plain last layer)
    for i in range(num_task):
        g = jnp.dot(g.astype(bf16), tw_ref[i], preferred_element_type=jnp.float32)
        g = g + tb_ref[pl.ds(i, 1), :]
        if i < num_task - 1:
            g = jnp.maximum(g, 0.0)

    out_ref[...] = g


# ------------------------------ model wrapper ------------------------------

def _round_up(v, m):
    return (v + m - 1) // m * m


def _pad2(a, rows, cols):
    """Zero-pad a 2-D array to (rows, cols)."""
    return jnp.zeros((rows, cols), a.dtype).at[:a.shape[0], :a.shape[1]].set(a)


def init_params(key, node_feat, in_ch, hid_ch, out_ch, num_layers, mlp_channels):
    """Deterministic Glorot-uniform init for all Linear layers (f32 master copy)."""
    def glorot(k, fan_in, fan_out):
        lim = (6.0 / (fan_in + fan_out)) ** 0.5
        return jax.random.uniform(k, (fan_in, fan_out), jnp.float32, -lim, lim)

    keys = iter(jax.random.split(key, 64))
    params = {}
    # NodeFeatEmbed: MLP([node_feat, in_ch]) -> single plain Linear
    params["embed_w"] = glorot(next(keys), node_feat, in_ch)
    params["embed_b"] = jnp.zeros((1, in_ch), jnp.float32)
    # GIN convs: layer l maps c_in -> c_out with nn = MLP([c_in, c_out, c_out])
    gin = []
    for l in range(num_layers):
        c_in = in_ch if l == 0 else hid_ch
        c_out = out_ch if l == num_layers - 1 else hid_ch
        gin.append(dict(
            w1=glorot(next(keys), c_in, c_out), b1=jnp.zeros((1, c_out), jnp.float32),
            w2=glorot(next(keys), c_out, c_out), b2=jnp.zeros((1, c_out), jnp.float32),
        ))
    params["gin"] = gin
    # TaskLayer: MLP(mlp_channels), plain last layer
    task = []
    for i in range(len(mlp_channels) - 1):
        task.append(dict(
            w=glorot(next(keys), mlp_channels[i], mlp_channels[i + 1]),
            b=jnp.zeros((1, mlp_channels[i + 1]), jnp.float32),
        ))
    params["task"] = task
    return params


def prepare_padded_params(params):
    """Pad / stack / cast every weight ONCE, outside the per-call jitted path.

    Weights are padded to a common 128-lane width (zero padding => exact math),
    cast to bf16 for the MXU; biases stay f32 as flat [L, D] stacks.
    """
    gin, task = params["gin"], params["task"]
    dims = [params["embed_w"].shape[1]]
    for p in gin:
        dims += [p["w1"].shape[0], p["w1"].shape[1], p["w2"].shape[1]]
    for p in task:
        dims += [p["w"].shape[0], p["w"].shape[1]]
    d_pad = _round_up(max(dims), _LANE)
    f_pad = _round_up(params["embed_w"].shape[0], _LANE)
    bf = jnp.bfloat16
    return {
        "ew": _pad2(params["embed_w"], f_pad, d_pad).astype(bf),
        "eb": _pad2(params["embed_b"], 1, d_pad),                               # f32 (1,D)
        "gw1": jnp.stack([_pad2(p["w1"], d_pad, d_pad) for p in gin]).astype(bf),
        "gb1": jnp.stack([_pad2(p["b1"], 1, d_pad)[0] for p in gin]),           # f32 (L,D)
        "gw2": jnp.stack([_pad2(p["w2"], d_pad, d_pad) for p in gin]).astype(bf),
        "gb2": jnp.stack([_pad2(p["b2"], 1, d_pad)[0] for p in gin]),
        "tw": jnp.stack([_pad2(p["w"], d_pad, d_pad) for p in task]).astype(bf),
        "tb": jnp.stack([_pad2(p["b"], 1, d_pad)[0] for p in task]),
    }


def pyg_gin_forward(padded, x, edge_index, batch, num_graphs, *, eps, out_size):
    """Steady-state forward: only per-input glue (adjacency / pool / x padding)
    runs here; all weights arrive pre-padded, pre-stacked and pre-cast."""
    num_nodes, _ = x.shape
    f_pad, d_pad = padded["ew"].shape
    num_gin = padded["gw1"].shape[0]
    num_task = padded["tw"].shape[0]
    n_pad = _round_up(num_nodes, _SUBLANE)
    g_pad = _round_up(num_graphs, _SUBLANE)

    # ---- plain-JAX glue: densify graph structure, zero-pad operands --------
    # A_hat[i,j] = #edges j->i, plus (1+eps) on the diagonal of REAL nodes only
    # (padded adjacency/pool columns stay zero, so bias-only garbage in padded
    # node rows never leaks into real outputs).  Edge counts are exact in bf16;
    # the 1+eps diagonal picks up one bf16 rounding (<0.2%).
    src, dst = edge_index[0], edge_index[1]
    iota = jnp.arange(num_nodes)
    adj = jnp.zeros((n_pad, n_pad), jnp.float32).at[dst, src].add(1.0)
    adj = adj.at[iota, iota].add(1.0 + eps).astype(jnp.bfloat16)
    # P[g, i] = 1 iff node i belongs to graph g (0/1 exact in bf16)
    pool = jnp.zeros((g_pad, n_pad), jnp.float32).at[batch, iota].set(1.0)
    pool = pool.astype(jnp.bfloat16)
    xp = _pad2(x, n_pad, f_pad).astype(jnp.bfloat16)

    # ---- one fused pallas_call: everything resident in VMEM ----------------
    # TODO(synk): at larger N, batch many graphs per call (block-diag adjacency)
    #             and add a "parallel" node-row grid axis with BlockSpec-tiled
    #             adj/x/h so DMA pipelines and both v7x TensorCores are used.
    out = pl.pallas_call(
        functools.partial(_fused_gin_kernel, num_gin=num_gin, num_task=num_task),
        out_shape=jax.ShapeDtypeStruct((g_pad, d_pad), jnp.float32),
        in_specs=[_VMEM] * 11,
        out_specs=_VMEM,
    )(xp, adj, pool, padded["ew"], padded["eb"],
      padded["gw1"], padded["gb1"], padded["gw2"], padded["gb2"],
      padded["tw"], padded["tb"])

    return out[:num_graphs, :out_size]


# ------------------------- pure-JAX reference check -------------------------

def _ref_forward(params, x, edge_index, batch, num_graphs, *, eps, mxu_dtype=None):
    """Reference forward.

    mxu_dtype=None       -> exact f32 PyTorch/PyG semantics.
    mxu_dtype=bfloat16   -> same bf16 MXU-input casting + eps-folded adjacency
                            as the Pallas kernel (tight implementation check).
    """
    hp = jax.lax.Precision.HIGHEST

    def mm(a, b):
        if mxu_dtype is None:
            return jnp.dot(a, b, precision=hp)
        return jnp.dot(a.astype(mxu_dtype), b.astype(mxu_dtype),
                       preferred_element_type=jnp.float32)

    src, dst = edge_index[0], edge_index[1]
    n = x.shape[0]
    iota = jnp.arange(n)
    adj = jnp.zeros((n, n), jnp.float32).at[dst, src].add(1.0)
    adj_hat = adj.at[iota, iota].add(1.0 + eps)

    h = mm(x, params["embed_w"]) + params["embed_b"]
    ngin = len(params["gin"])
    for l, p in enumerate(params["gin"]):
        if mxu_dtype is None:
            z = (1.0 + eps) * h + mm(adj, h)       # original GINConv formulation
        else:
            z = mm(adj_hat, h)                     # kernel (diag-folded) formulation
        t = jnp.maximum(mm(z, p["w1"]) + p["b1"], 0.0)
        h = mm(t, p["w2"]) + p["b2"]
        if l < ngin - 1:
            h = jnp.maximum(h, 0.0)

    pool = (batch[None, :] == jnp.arange(num_graphs)[:, None]).astype(jnp.float32)
    g = mm(pool, h)
    ntask = len(params["task"])
    for i, p in enumerate(params["task"]):
        g = mm(g, p["w"]) + p["b"]
        if i < ntask - 1:
            g = jnp.maximum(g, 0.0)
    return g


# ---------------------------------- main -----------------------------------

if __name__ == "__main__":
    # opt.args equivalents (small synthetic config)
    ATOM_FEAT = 16        # AtomFeatureSize
    GIN_IN = 32           # GINInputSize
    GIN_HID = 32          # GINHiddenSize
    FP_SIZE = 32          # FPSize
    GIN_EPS = 0.1         # GINEps
    GIN_LAYERS = 3        # GINLayers
    DNN_LAYERS = [32, 16] # DNNLayers
    OUT_SIZE = 2          # OutputSize
    MLP_CHANNELS = [FP_SIZE] + DNN_LAYERS + [OUT_SIZE]

    NUM_NODES = 16
    NUM_EDGES = 24
    NUM_GRAPHS = 2

    key = jax.random.PRNGKey(0)
    k_x, k_src, k_dst, k_params = jax.random.split(key, 4)

    x = jax.random.normal(k_x, (NUM_NODES, ATOM_FEAT), jnp.float32)
    src = jax.random.randint(k_src, (NUM_EDGES,), 0, NUM_NODES, jnp.int32)
    dst = jax.random.randint(k_dst, (NUM_EDGES,), 0, NUM_NODES, jnp.int32)
    edge_index = jnp.stack([src, dst], axis=0)                 # [2, E]
    batch = jnp.concatenate([jnp.zeros(NUM_NODES // 2, jnp.int32),
                             jnp.ones(NUM_NODES - NUM_NODES // 2, jnp.int32)])

    params = init_params(k_params, ATOM_FEAT, GIN_IN, GIN_HID, FP_SIZE,
                         GIN_LAYERS, MLP_CHANNELS)
    # Pad / stack / cast weights ONCE, outside the jitted steady-state path.
    padded = prepare_padded_params(params)

    @functools.partial(jax.jit, static_argnames=("num_graphs", "eps", "out_size"))
    def fwd(padded, x, edge_index, batch, *, num_graphs, eps, out_size):
        return pyg_gin_forward(padded, x, edge_index, batch, num_graphs,
                               eps=eps, out_size=out_size)

    out = fwd(padded, x, edge_index, batch,
              num_graphs=NUM_GRAPHS, eps=GIN_EPS, out_size=OUT_SIZE)
    out = jax.block_until_ready(out)
    assert out.shape == (NUM_GRAPHS, OUT_SIZE) and out.dtype == jnp.float32

    # Tight check: independent pure-JAX implementation using the SAME bf16
    # MXU-input casting as the kernel (validates wiring / padding / eps-folding).
    ref_bf16 = _ref_forward(params, x, edge_index, batch, NUM_GRAPHS,
                            eps=GIN_EPS, mxu_dtype=jnp.bfloat16)
    assert jnp.allclose(out, ref_bf16, rtol=1e-2, atol=1e-2), (out, ref_bf16)

    # Sanity check vs. exact f32 PyTorch semantics; the only residual is the
    # bf16 MXU-input quantization requested by the perf review, so the bound
    # is deliberately loose.
    ref_f32 = _ref_forward(params, x, edge_index, batch, NUM_GRAPHS, eps=GIN_EPS)
    assert jnp.allclose(out, ref_f32, rtol=2.5e-1, atol=2.5e-1), (out, ref_f32)

    print("KERNEL_OK")
</pallas_src>

<mosaic_0001>
module attributes {stable_mosaic.version = 11 : i64} {
  func.func @_fused_gin_kernel(%arg0: memref<16x128xbf16, #tpu.memory_space<vmem>>, %arg1: memref<16x16xbf16, #tpu.memory_space<vmem>>, %arg2: memref<8x16xbf16, #tpu.memory_space<vmem>>, %arg3: memref<128x128xbf16, #tpu.memory_space<vmem>>, %arg4: memref<1x128xf32, #tpu.memory_space<vmem>>, %arg5: memref<3x128x128xbf16, #tpu.memory_space<vmem>>, %arg6: memref<3x128xf32, #tpu.memory_space<vmem>>, %arg7: memref<3x128x128xbf16, #tpu.memory_space<vmem>>, %arg8: memref<3x128xf32, #tpu.memory_space<vmem>>, %arg9: memref<3x128x128xbf16, #tpu.memory_space<vmem>>, %arg10: memref<3x128xf32, #tpu.memory_space<vmem>>, %arg11: memref<8x128xf32, #tpu.memory_space<vmem>>) attributes {dimension_semantics = [], scalar_prefetch = 0 : i64, scratch_operands = 0 : i64, tpu.core_type = #tpu.core_type<tc>} {
    %c0 = arith.constant 0 : index
    %c0_0 = arith.constant 0 : index
    %0 = vector.load %arg0[%c0, %c0_0] : memref<16x128xbf16, #tpu.memory_space<vmem>>, vector<16x128xbf16>
    %c0_1 = arith.constant 0 : index
    %c0_2 = arith.constant 0 : index
    %1 = vector.load %arg3[%c0_1, %c0_2] : memref<128x128xbf16, #tpu.memory_space<vmem>>, vector<128x128xbf16>
    %cst = arith.constant dense<0.000000e+00> : vector<16x128xf32>
    %2 = tpu.matmul %0, %1, %cst {dimension_numbers = #tpu.dot_dimension_numbers<[1], [0], [0], [1], [0, 0, 1, 1], [], []>} : vector<16x128xbf16>, vector<128x128xbf16>, vector<16x128xf32> -> vector<16x128xf32>
    %c0_3 = arith.constant 0 : index
    %c0_4 = arith.constant 0 : index
    %3 = vector.load %arg4[%c0_3, %c0_4] : memref<1x128xf32, #tpu.memory_space<vmem>>, vector<1x128xf32>
    %4 = vector.broadcast %3 : vector<1x128xf32> to vector<16x128xf32>
    %5 = arith.addf %2, %4 : vector<16x128xf32>
    %c0_5 = arith.constant 0 : index
    %c0_6 = arith.constant 0 : index
    %6 = vector.load %arg1[%c0_5, %c0_6] : memref<16x16xbf16, #tpu.memory_space<vmem>>, vector<16x16xbf16>
    %7 = arith.truncf %5 : vector<16x128xf32> to vector<16x128xbf16>
    %cst_7 = arith.constant dense<0.000000e+00> : vector<16x128xf32>
    %8 = tpu.matmul %6, %7, %cst_7 {dimension_numbers = #tpu.dot_dimension_numbers<[1], [0], [0], [1], [0, 0, 1, 1], [], []>} : vector<16x16xbf16>, vector<16x128xbf16>, vector<16x128xf32> -> vector<16x128xf32>
    %9 = arith.truncf %8 : vector<16x128xf32> to vector<16x128xbf16>
    %c0_8 = arith.constant 0 : index
    %c0_9 = arith.constant 0 : index
    %c0_10 = arith.constant 0 : index
    %10 = vector.load %arg5[%c0_8, %c0_9, %c0_10] : memref<3x128x128xbf16, #tpu.memory_space<vmem>>, vector<1x128x128xbf16>
    %11 = vector.shape_cast %10 : vector<1x128x128xbf16> to vector<128x128xbf16>
    %cst_11 = arith.constant dense<0.000000e+00> : vector<16x128xf32>
    %12 = tpu.matmul %9, %11, %cst_11 {dimension_numbers = #tpu.dot_dimension_numbers<[1], [0], [0], [1], [0, 0, 1, 1], [], []>} : vector<16x128xbf16>, vector<128x128xbf16>, vector<16x128xf32> -> vector<16x128xf32>
    %c0_12 = arith.constant 0 : index
    %c0_13 = arith.constant 0 : index
    %13 = vector.load %arg6[%c0_12, %c0_13] : memref<3x128xf32, #tpu.memory_space<vmem>>, vector<1x128xf32>
    %14 = vector.broadcast %13 : vector<1x128xf32> to vector<16x128xf32>
    %15 = arith.addf %12, %14 : vector<16x128xf32>
    %cst_14 = arith.constant 0.000000e+00 : f32
    %16 = vector.broadcast %cst_14 : f32 to vector<16x128xf32>
    %17 = arith.maximumf %15, %16 : vector<16x128xf32>
    %18 = arith.truncf %17 : vector<16x128xf32> to vector<16x128xbf16>
    %c0_15 = arith.constant 0 : index
    %c0_16 = arith.constant 0 : index
    %c0_17 = arith.constant 0 : index
    %19 = vector.load %arg7[%c0_15, %c0_16, %c0_17] : memref<3x128x128xbf16, #tpu.memory_space<vmem>>, vector<1x128x128xbf16>
    %20 = vector.shape_cast %19 : vector<1x128x128xbf16> to vector<128x128xbf16>
    %cst_18 = arith.constant dense<0.000000e+00> : vector<16x128xf32>
    %21 = tpu.matmul %18, %20, %cst_18 {dimension_numbers = #tpu.dot_dimension_numbers<[1], [0], [0], [1], [0, 0, 1, 1], [], []>} : vector<16x128xbf16>, vector<128x128xbf16>, vector<16x128xf32> -> vector<16x128xf32>
    %c0_19 = arith.constant 0 : index
    %c0_20 = arith.constant 0 : index
    %22 = vector.load %arg8[%c0_19, %c0_20] : memref<3x128xf32, #tpu.memory_space<vmem>>, vector<1x128xf32>
    %23 = vector.broadcast %22 : vector<1x128xf32> to vector<16x128xf32>
    %24 = arith.addf %21, %23 : vector<16x128xf32>
    %cst_21 = arith.constant 0.000000e+00 : f32
    %25 = vector.broadcast %cst_21 : f32 to vector<16x128xf32>
    %26 = arith.maximumf %24, %25 : vector<16x128xf32>
    %27 = arith.truncf %26 : vector<16x128xf32> to vector<16x128xbf16>
    %cst_22 = arith.constant dense<0.000000e+00> : vector<16x128xf32>
    %28 = tpu.matmul %6, %27, %cst_22 {dimension_numbers = #tpu.dot_dimension_numbers<[1], [0], [0], [1], [0, 0, 1, 1], [], []>} : vector<16x16xbf16>, vector<16x128xbf16>, vector<16x128xf32> -> vector<16x128xf32>
    %29 = arith.truncf %28 : vector<16x128xf32> to vector<16x128xbf16>
    %c1 = arith.constant 1 : index
    %c0_23 = arith.constant 0 : index
    %c0_24 = arith.constant 0 : index
    %30 = vector.load %arg5[%c1, %c0_23, %c0_24] : memref<3x128x128xbf16, #tpu.memory_space<vmem>>, vector<1x128x128xbf16>
    %31 = vector.shape_cast %30 : vector<1x128x128xbf16> to vector<128x128xbf16>
    %cst_25 = arith.constant dense<0.000000e+00> : vector<16x128xf32>
    %32 = tpu.matmul %29, %31, %cst_25 {dimension_numbers = #tpu.dot_dimension_numbers<[1], [0], [0], [1], [0, 0, 1, 1], [], []>} : vector<16x128xbf16>, vector<128x128xbf16>, vector<16x128xf32> -> vector<16x128xf32>
    %c1_26 = arith.constant 1 : index
    %c0_27 = arith.constant 0 : index
    %33 = vector.load %arg6[%c1_26, %c0_27] : memref<3x128xf32, #tpu.memory_space<vmem>>, vector<1x128xf32>
    %34 = vector.broadcast %33 : vector<1x128xf32> to vector<16x128xf32>
    %35 = arith.addf %32, %34 : vector<16x128xf32>
    %cst_28 = arith.constant 0.000000e+00 : f32
    %36 = vector.broadcast %cst_28 : f32 to vector<16x128xf32>
    %37 = arith.maximumf %35, %36 : vector<16x128xf32>
    %38 = arith.truncf %37 : vector<16x128xf32> to vector<16x128xbf16>
    %c1_29 = arith.constant 1 : index
    %c0_30 = arith.constant 0 : index
    %c0_31 = arith.constant 0 : index
    %39 = vector.load %arg7[%c1_29, %c0_30, %c0_31] : memref<3x128x128xbf16, #tpu.memory_space<vmem>>, vector<1x128x128xbf16>
    %40 = vector.shape_cast %39 : vector<1x128x128xbf16> to vector<128x128xbf16>
    %cst_32 = arith.constant dense<0.000000e+00> : vector<16x128xf32>
    %41 = tpu.matmul %38, %40, %cst_32 {dimension_numbers = #tpu.dot_dimension_numbers<[1], [0], [0], [1], [0, 0, 1, 1], [], []>} : vector<16x128xbf16>, vector<128x128xbf16>, vector<16x128xf32> -> vector<16x128xf32>
    %c1_33 = arith.constant 1 : index
    %c0_34 = arith.constant 0 : index
    %42 = vector.load %arg8[%c1_33, %c0_34] : memref<3x128xf32, #tpu.memory_space<vmem>>, vector<1x128xf32>
    %43 = vector.broadcast %42 : vector<1x128xf32> to vector<16x128xf32>
    %44 = arith.addf %41, %43 : vector<16x128xf32>
    %cst_35 = arith.constant 0.000000e+00 : f32
    %45 = vector.broadcast %cst_35 : f32 to vector<16x128xf32>
    %46 = arith.maximumf %44, %45 : vector<16x128xf32>
    %47 = arith.truncf %46 : vector<16x128xf32> to vector<16x128xbf16>
    %cst_36 = arith.constant dense<0.000000e+00> : vector<16x128xf32>
    %48 = tpu.matmul %6, %47, %cst_36 {dimension_numbers = #tpu.dot_dimension_numbers<[1], [0], [0], [1], [0, 0, 1, 1], [], []>} : vector<16x16xbf16>, vector<16x128xbf16>, vector<16x128xf32> -> vector<16x128xf32>
    %49 = arith.truncf %48 : vector<16x128xf32> to vector<16x128xbf16>
    %c2 = arith.constant 2 : index
    %c0_37 = arith.constant 0 : index
    %c0_38 = arith.constant 0 : index
    %50 = vector.load %arg5[%c2, %c0_37, %c0_38] : memref<3x128x128xbf16, #tpu.memory_space<vmem>>, vector<1x128x128xbf16>
    %51 = vector.shape_cast %50 : vector<1x128x128xbf16> to vector<128x128xbf16>
    %cst_39 = arith.constant dense<0.000000e+00> : vector<16x128xf32>
    %52 = tpu.matmul %49, %51, %cst_39 {dimension_numbers = #tpu.dot_dimension_numbers<[1], [0], [0], [1], [0, 0, 1, 1], [], []>} : vector<16x128xbf16>, vector<128x128xbf16>, vector<16x128xf32> -> vector<16x128xf32>
    %c2_40 = arith.constant 2 : index
    %c0_41 = arith.constant 0 : index
    %53 = vector.load %arg6[%c2_40, %c0_41] : memref<3x128xf32, #tpu.memory_space<vmem>>, vector<1x128xf32>
    %54 = vector.broadcast %53 : vector<1x128xf32> to vector<16x128xf32>
    %55 = arith.addf %52, %54 : vector<16x128xf32>
    %cst_42 = arith.constant 0.000000e+00 : f32
    %56 = vector.broadcast %cst_42 : f32 to vector<16x128xf32>
    %57 = arith.maximumf %55, %56 : vector<16x128xf32>
    %58 = arith.truncf %57 : vector<16x128xf32> to vector<16x128xbf16>
    %c2_43 = arith.constant 2 : index
    %c0_44 = arith.constant 0 : index
    %c0_45 = arith.constant 0 : index
    %59 = vector.load %arg7[%c2_43, %c0_44, %c0_45] : memref<3x128x128xbf16, #tpu.memory_space<vmem>>, vector<1x128x128xbf16>
    %60 = vector.shape_cast %59 : vector<1x128x128xbf16> to vector<128x128xbf16>
    %cst_46 = arith.constant dense<0.000000e+00> : vector<16x128xf32>
    %61 = tpu.matmul %58, %60, %cst_46 {dimension_numbers = #tpu.dot_dimension_numbers<[1], [0], [0], [1], [0, 0, 1, 1], [], []>} : vector<16x128xbf16>, vector<128x128xbf16>, vector<16x128xf32> -> vector<16x128xf32>
    %c2_47 = arith.constant 2 : index
    %c0_48 = arith.constant 0 : index
    %62 = vector.load %arg8[%c2_47, %c0_48] : memref<3x128xf32, #tpu.memory_space<vmem>>, vector<1x128xf32>
    %63 = vector.broadcast %62 : vector<1x128xf32> to vector<16x128xf32>
    %64 = arith.addf %61, %63 : vector<16x128xf32>
    %c0_49 = arith.constant 0 : index
    %c0_50 = arith.constant 0 : index
    %65 = vector.load %arg2[%c0_49, %c0_50] : memref<8x16xbf16, #tpu.memory_space<vmem>>, vector<8x16xbf16>
    %66 = arith.truncf %64 : vector<16x128xf32> to vector<16x128xbf16>
    %cst_51 = arith.constant dense<0.000000e+00> : vector<8x128xf32>
    %67 = tpu.matmul %65, %66, %cst_51 {dimension_numbers = #tpu.dot_dimension_numbers<[1], [0], [0], [1], [0, 0, 1, 1], [], []>} : vector<8x16xbf16>, vector<16x128xbf16>, vector<8x128xf32> -> vector<8x128xf32>
    %68 = arith.truncf %67 : vector<8x128xf32> to vector<8x128xbf16>
    %c0_52 = arith.constant 0 : index
    %c0_53 = arith.constant 0 : index
    %c0_54 = arith.constant 0 : index
    %69 = vector.load %arg9[%c0_52, %c0_53, %c0_54] : memref<3x128x128xbf16, #tpu.memory_space<vmem>>, vector<1x128x128xbf16>
    %70 = vector.shape_cast %69 : vector<1x128x128xbf16> to vector<128x128xbf16>
    %cst_55 = arith.constant dense<0.000000e+00> : vector<8x128xf32>
    %71 = tpu.matmul %68, %70, %cst_55 {dimension_numbers = #tpu.dot_dimension_numbers<[1], [0], [0], [1], [0, 0, 1, 1], [], []>} : vector<8x128xbf16>, vector<128x128xbf16>, vector<8x128xf32> -> vector<8x128xf32>
    %c0_56 = arith.constant 0 : index
    %c0_57 = arith.constant 0 : index
    %72 = vector.load %arg10[%c0_56, %c0_57] : memref<3x128xf32, #tpu.memory_space<vmem>>, vector<1x128xf32>
    %73 = vector.broadcast %72 : vector<1x128xf32> to vector<8x128xf32>
    %74 = arith.addf %71, %73 : vector<8x128xf32>
    %cst_58 = arith.constant 0.000000e+00 : f32
    %75 = vector.broadcast %cst_58 : f32 to vector<8x128xf32>
    %76 = arith.maximumf %74, %75 : vector<8x128xf32>
    %77 = arith.truncf %76 : vector<8x128xf32> to vector<8x128xbf16>
    %c1_59 = arith.constant 1 : index
    %c0_60 = arith.constant 0 : index
    %c0_61 = arith.constant 0 : index
    %78 = vector.load %arg9[%c1_59, %c0_60, %c0_61] : memref<3x128x128xbf16, #tpu.memory_space<vmem>>, vector<1x128x128xbf16>
    %79 = vector.shape_cast %78 : vector<1x128x128xbf16> to vector<128x128xbf16>
    %cst_62 = arith.constant dense<0.000000e+00> : vector<8x128xf32>
    %80 = tpu.matmul %77, %79, %cst_62 {dimension_numbers = #tpu.dot_dimension_numbers<[1], [0], [0], [1], [0, 0, 1, 1], [], []>} : vector<8x128xbf16>, vector<128x128xbf16>, vector<8x128xf32> -> vector<8x128xf32>
    %c1_63 = arith.constant 1 : index
    %c0_64 = arith.constant 0 : index
    %81 = vector.load %arg10[%c1_63, %c0_64] : memref<3x128xf32, #tpu.memory_space<vmem>>, vector<1x128xf32>
    %82 = vector.broadcast %81 : vector<1x128xf32> to vector<8x128xf32>
    %83 = arith.addf %80, %82 : vector<8x128xf32>
    %cst_65 = arith.constant 0.000000e+00 : f32
    %84 = vector.broadcast %cst_65 : f32 to vector<8x128xf32>
    %85 = arith.maximumf %83, %84 : vector<8x128xf32>
    %86 = arith.truncf %85 : vector<8x128xf32> to vector<8x128xbf16>
    %c2_66 = arith.constant 2 : index
    %c0_67 = arith.constant 0 : index
    %c0_68 = arith.constant 0 : index
    %87 = vector.load %arg9[%c2_66, %c0_67, %c0_68] : memref<3x128x128xbf16, #tpu.memory_space<vmem>>, vector<1x128x128xbf16>
    %88 = vector.shape_cast %87 : vector<1x128x128xbf16> to vector<128x128xbf16>
    %cst_69 = arith.constant dense<0.000000e+00> : vector<8x128xf32>
    %89 = tpu.matmul %86, %88, %cst_69 {dimension_numbers = #tpu.dot_dimension_numbers<[1], [0], [0], [1], [0, 0, 1, 1], [], []>} : vector<8x128xbf16>, vector<128x128xbf16>, vector<8x128xf32> -> vector<8x128xf32>
    %c2_70 = arith.constant 2 : index
    %c0_71 = arith.constant 0 : index
    %90 = vector.load %arg10[%c2_70, %c0_71] : memref<3x128xf32, #tpu.memory_space<vmem>>, vector<1x128xf32>
    %91 = vector.broadcast %90 : vector<1x128xf32> to vector<8x128xf32>
    %92 = arith.addf %89, %91 : vector<8x128xf32>
    %c0_72 = arith.constant 0 : index
    %c0_73 = arith.constant 0 : index
    %93 = vector.load %arg11[%c0_72, %c0_73] : memref<8x128xf32, #tpu.memory_space<vmem>>, vector<8x128xf32>
    tpu.vector_store %arg11[%c0_72, %c0_73], %92 {strides = array<i32>} : memref<8x128xf32, #tpu.memory_space<vmem>>, vector<8x128xf32>,
    return
  }
}

</mosaic_0001>

<bundles_post_ra>
// kernel: fwd.1
= control target key start
LH: loop header
LB: loop body
LE: loop exit
PB: predicated region body
PF: predicated region fallthrough
CT: control target
= control target key end

     0   :  { %vm137_vm0 = vcmask 130048   ;;  %s1823_s3 = inlined_call_operand.vmem [shape: bf16[128,128], index: 3, kind: input, shape index: {}]   ;;  %s1824_s4 = inlined_call_operand.vmem [shape: f32[1,128], index: 4, kind: input, shape index: {}]   ;;  %s1825_s0 = inlined_call_operand.vmem [shape: bf16[16,128], index: 0, kind: input, shape index: {}]   ;;  %s1826_s5 = inlined_call_operand.vmem [shape: bf16[3,128,128], index: 5, kind: input, shape index: {}]   ;;  %s1827_s1 = inlined_call_operand.vmem [shape: bf16[16,16], index: 1, kind: input, shape index: {}]   ;;  %s1828_s6 = inlined_call_operand.vmem [shape: f32[3,128], index: 6, kind: input, shape index: {}]   ;;  %s1829_s7 = inlined_call_operand.vmem [shape: bf16[3,128,128], index: 7, kind: input, shape index: {}]   ;;  %s1830_s8 = inlined_call_operand.vmem [shape: f32[3,128], index: 8, kind: input, shape index: {}]   ;;  %s1831_s9 = inlined_call_operand.vmem [shape: bf16[3,128,128], index: 9, kind: input, shape index: {}]   ;;  %s1832_s2 = inlined_call_operand.vmem [shape: bf16[8,16], index: 2, kind: input, shape index: {}]   ;;  %s1833_s10 = inlined_call_operand.vmem [shape: f32[3,128], index: 10, kind: input, shape index: {}]   ;;  %s1834_s11 = inlined_call_operand.vmem [shape: f32[8,128], index: 11, kind: output, shape index: {}]  }
   0x1   :  { %v1388_v0 = vld [vmem:[%s1823_s3 + $0x38] sm:$0xff]  ;;  %v1387_v1 = vld [vmem:[%s1823_s3 + $0x30] sm:$0xff]  ;;  %v1386_v2 = vld [vmem:[%s1823_s3 + $0x28] sm:$0xff] }
   0x2   :  { %115 = vmatpush.bf16.msra.mxu0 %v1388_v0  ;;  %v1385_v3 = vld [vmem:[%s1823_s3 + $0x20] sm:$0xff]  ;;  %v1384_v4 = vld [vmem:[%s1823_s3 + $0x18] sm:$0xff]  ;;  %v1383_v5 = vld [vmem:[%s1823_s3 + $0x10] sm:$0xff] }
   0x3   :  { %v1382_v6 = vld [vmem:[%s1823_s3 + $0x8] sm:$0xff]  ;;  %v1381_v7 = vld [vmem:[%s1823_s3] sm:$0xff]  ;;  %v1397_v14 = vld [vmem:[%s1826_s5 + $0x38] sm:$0xff] }
   0x4   :  { %v1380_v8 = vld [vmem:[%s1825_s0] sm:$0xff]  ;;  %v1396_v17 = vld [vmem:[%s1826_s5 + $0x30] sm:$0xff]  ;;  %v1395_v18 = vld [vmem:[%s1826_s5 + $0x28] sm:$0xff] }
   0x5   :  { %v1462_v10 = vld [vmem:[%s1824_s4] ss:$0 sm:$0xff]  ;;  %v1393_v20 = vld [vmem:[%s1826_s5 + $0x18] sm:$0xff]  ;;  %v1392_v21 = vld [vmem:[%s1826_s5 + $0x10] sm:$0xff] }
   0x6   :  { %116 = vmatpush.bf16.msra.mxu0 %v1387_v1  ;;  %v1568_v16 = vld [vmem:[%s1827_s1] sm:$0xff]  ;;  %v1391_v22 = vld [vmem:[%s1826_s5 + $0x8] sm:$0xff]  ;;  %v1405_v24 = vld [vmem:[%s1829_s7 + $0x38] sm:$0xff] }
   0x7   :  { %v1394_v19 = vld [vmem:[%s1826_s5 + $0x20] sm:$0xff]  ;;  %305 = vmatpush.bf16.msra.mxu3 %v1405_v24  ;;  %v1404_v25 = vld [vmem:[%s1829_s7 + $0x30] sm:$0xff]  ;;  %v1403_v26 = vld [vmem:[%s1829_s7 + $0x28] sm:$0xff] }
   0x8   :  { %v1390_v23 = vld [vmem:[%s1826_s5] sm:$0xff]  ;;  %v1401_v31 = vld [vmem:[%s1829_s7 + $0x18] sm:$0xff]  ;;  %v1400_v32 = vld [vmem:[%s1829_s7 + $0x10] sm:$0xff] }
   0x9   :  { %v1402_v27 = vld [vmem:[%s1829_s7 + $0x20] sm:$0xff]  ;;  %v1399_v33 = vld [vmem:[%s1829_s7 + $0x8] sm:$0xff]  ;;  %v1413_v50 = vld [vmem:[%s1826_s5 + $0x78] sm:$0xff] }
   0xa   :  { %117 = vmatpush.bf16.msra.mxu0 %v1386_v2  ;;  %v1398_v34 = vld [vmem:[%s1829_s7] sm:$0xff]  ;;  %v1412_v52 = vld [vmem:[%s1826_s5 + $0x70] sm:$0xff]  ;;  %v1411_v53 = vld [vmem:[%s1826_s5 + $0x68] sm:$0xff] }
   0xb   :  { %306 = vmatpush.bf16.msra.mxu3 %v1404_v25  ;;  %v1463_v36 = vld [vmem:[%s1828_s6] ss:$0 sm:$0xff]  ;;  %v1409_v55 = vld [vmem:[%s1826_s5 + $0x58] sm:$0xff]  ;;  %v1408_v56 = vld [vmem:[%s1826_s5 + $0x50] sm:$0xff] }
   0xc   :  { %v1464_v44 = vld [vmem:[%s1830_s8] ss:$0 sm:$0xff]  ;;  %v1407_v57 = vld [vmem:[%s1826_s5 + $0x48] sm:$0xff]  ;;  %v1421_v59 = vld [vmem:[%s1829_s7 + $0x78] sm:$0xff] }
   0xd   :  { %v1410_v54 = vld [vmem:[%s1826_s5 + $0x60] sm:$0xff]  ;;  %v1420_v60 = vld [vmem:[%s1829_s7 + $0x70] sm:$0xff]  ;;  %v1419_v61 = vld [vmem:[%s1829_s7 + $0x68] sm:$0xff] }
   0xe   :  { %118 = vmatpush.bf16.msra.mxu0 %v1385_v3  ;;  %v1406_v58 = vld [vmem:[%s1826_s5 + $0x40] sm:$0xff]  ;;  %v1417_v2 = vld [vmem:[%s1829_s7 + $0x58] sm:$0xff]  ;;  %v1416_v3 = vld [vmem:[%s1829_s7 + $0x50] sm:$0xff] }
   0xf   :  { %307 = vmatpush.bf16.msra.mxu3 %v1403_v26  ;;  %v1418_v62 = vld [vmem:[%s1829_s7 + $0x60] sm:$0xff] }
  0x12   :  { %119 = vmatpush.bf16.msra.mxu0 %v1384_v4  ;;  %v1415_v4 = vld [vmem:[%s1829_s7 + $0x48] sm:$0xff] }
  0x13   :  { %308 = vmatpush.bf16.msra.mxu3 %v1402_v27 }
  0x16   :  { %120 = vmatpush.bf16.msra.mxu0 %v1383_v5  ;;  %v1414_v5 = vld [vmem:[%s1829_s7 + $0x40] sm:$0xff] }
  0x17   :  { %309 = vmatpush.bf16.msra.mxu3 %v1401_v31  ;;  %v1437_v31 = vld [vmem:[%s1829_s7 + $0xb8] sm:$0xff] }
  0x1a   :  { %121 = vmatpush.bf16.msra.mxu0 %v1382_v6 }
  0x1b   :  { %310 = vmatpush.bf16.msra.mxu3 %v1400_v32  ;;  %v1435_v32 = vld [vmem:[%s1829_s7 + $0xa8] sm:$0xff] }
  0x1e   :  { %122 = vmatpush.bf16.msra.mxu0 %v1381_v7  ;;  %v1465_v7 = vld [vmem:[%s1828_s6 + $0x1] ss:$0 sm:$0xff] }
  0x1f   :  { %311 = vmatpush.bf16.msra.mxu3 %v1399_v33  ;;  %v1434_v33 = vld [vmem:[%s1829_s7 + $0xa0] sm:$0xff] }
  0x21   :  { %123 = vmatmul.bf16.vlgmr.msra.gmra.mxu0 %v1380_v8 }
  0x22   :  { %488 = vmatpush.bf16.msrb.mxu0 %v1421_v59 }
  0x23   :  { %312 = vmatpush.bf16.msra.mxu3 %v1398_v34 }
  0x26   :  { %489 = vmatpush.bf16.msrb.mxu0 %v1420_v60 }
  0x2a   :  { %490 = vmatpush.bf16.msrb.mxu0 %v1419_v61 }
  0x2e   :  { %491 = vmatpush.bf16.msrb.mxu0 %v1418_v62  ;;  %v685_v62 = vld [vmem:[%s1832_s2] sm:$0xf] }
  0x32   :  { %492 = vmatpush.bf16.msrb.mxu0 %v1417_v2  ;;  %v1451_v2 = vld [vmem:[%s1831_s9 + $0x68] sm:$0xff] }
  0x36   :  { %493 = vmatpush.bf16.msrb.mxu0 %v1416_v3  ;;  %v1450_v3 = vld [vmem:[%s1831_s9 + $0x60] sm:$0xff] }
  0x3a   :  { %494 = vmatpush.bf16.msrb.mxu0 %v1415_v4  ;;  %v1449_v4 = vld [vmem:[%s1831_s9 + $0x58] sm:$0xff] }
  0x3e   :  { %495 = vmatpush.bf16.msrb.mxu0 %v1414_v5  ;;  %v1448_v5 = vld [vmem:[%s1831_s9 + $0x50] sm:$0xff] }
  0x9e   :  { %v124_v9 = vpop.f32.mrf.mxu0 }
  0x9f   :  { %v125_v12 = vadd.f32 %v1462_v10, %v124_v9 }
  0xa6   :  { %v126_v11 = vpop.f32.mrf.mxu0 }
  0xa7   :  { %v127_v13 = vadd.f32 %v1462_v10, %v126_v11 }
  0xa9   :  { %v131_v15 = vpack.c.bf16 %v127_v13, %v125_v12 }
  0xab   :  { %148 = vmatpush.bf16.msra.mxu2 %v131_v15  ;;  %v1428_v15 = vld [vmem:[%s1826_s5 + $0xb0] sm:$0xff] }
  0xae   :  { %992 = vmatmul.msk.bf16.vlgmr.msra.gmra.mxu2 %vm137_vm0, %v1568_v16 }
  0xaf   :  { %222 = vmatpush.bf16.msrb.mxu2 %v1397_v14  ;;  %v1429_v14 = vld [vmem:[%s1826_s5 + $0xb8] sm:$0xff] }
  0xb0   :  { %587 = vmatpush.bf16.msrb.mxu3 %v1429_v14  ;;  %v1458_v14 = vld [vmem:[%s1831_s9 + $0xa0] sm:$0xff] }
  0xb3   :  { %223 = vmatpush.bf16.msrb.mxu2 %v1396_v17  ;;  %v1427_v17 = vld [vmem:[%s1826_s5 + $0xa8] sm:$0xff] }
  0xb4   :  { %588 = vmatpush.bf16.msrb.mxu3 %v1428_v15  ;;  %v1457_v15 = vld [vmem:[%s1831_s9 + $0x98] sm:$0xff] }
  0xb7   :  { %224 = vmatpush.bf16.msrb.mxu2 %v1395_v18  ;;  %v1426_v18 = vld [vmem:[%s1826_s5 + $0xa0] sm:$0xff] }
  0xb8   :  { %589 = vmatpush.bf16.msrb.mxu3 %v1427_v17  ;;  %v1456_v17 = vld [vmem:[%s1831_s9 + $0x90] sm:$0xff] }
  0xbb   :  { %225 = vmatpush.bf16.msrb.mxu2 %v1394_v19 }
  0xbc   :  { %590 = vmatpush.bf16.msrb.mxu3 %v1426_v18  ;;  %v1469_v18 = vld [vmem:[%s1833_s10] ss:$0 sm:$0xff] }
  0xbf   :  { %226 = vmatpush.bf16.msrb.mxu2 %v1393_v20  ;;  %v1425_v20 = vld [vmem:[%s1826_s5 + $0x98] sm:$0xff] }
  0xc0   :  { %591 = vmatpush.bf16.msrb.mxu3 %v1425_v20 }
  0xc3   :  { %227 = vmatpush.bf16.msrb.mxu2 %v1392_v21  ;;  %v1466_v21 = vld [vmem:[%s1830_s8 + $0x1] ss:$0 sm:$0xff] }
  0xc7   :  { %228 = vmatpush.bf16.msrb.mxu2 %v1391_v22 }
  0xcb   :  { %229 = vmatpush.bf16.msrb.mxu2 %v1390_v23 }
 0x131   :  { %v150_v28 = vpop.f32.mrf.mxu2 }
 0x139   :  { %v152_v29 = vpop.f32.mrf.mxu2 }
 0x13a   :  { %v155_v30 = vpack.c.bf16 %v152_v29, %v150_v28  ;;  %v1424_v28 = vld [vmem:[%s1826_s5 + $0x90] sm:$0xff]  ;;  %v1423_v29 = vld [vmem:[%s1826_s5 + $0x88] sm:$0xff] }
 0x13b   :  { %592 = vmatpush.bf16.msrb.mxu3 %v1424_v28 }
 0x13c   :  { %230 = vmatmul.bf16.vlgmr.msrb.gmra.mxu2 %v155_v30  ;;  %v1422_v30 = vld [vmem:[%s1826_s5 + $0x80] sm:$0xff] }
 0x13f   :  { %593 = vmatpush.bf16.msrb.mxu3 %v1423_v29 }
 0x143   :  { %594 = vmatpush.bf16.msrb.mxu3 %v1422_v30 }
 0x1bf   :  { %v231_v35 = vpop.f32.mrf.mxu2 }
 0x1c0   :  { %v232_v37 = vadd.f32 %v1463_v36, %v231_v35 }
 0x1c2   :  { %v236_v40 = vmax.f32 %v232_v37, 0.0  ;;  %v1433_v37 = vld [vmem:[%s1829_s7 + $0x98] sm:$0xff] }
 0x1c7   :  { %v233_v38 = vpop.f32.mrf.mxu2 }
 0x1c8   :  { %v234_v39 = vadd.f32 %v1463_v36, %v233_v38  ;;  %v1432_v38 = vld [vmem:[%s1829_s7 + $0x90] sm:$0xff] }
 0x1ca   :  { %v237_v41 = vmax.f32 %v234_v39, 0.0  ;;  %v1431_v39 = vld [vmem:[%s1829_s7 + $0x88] sm:$0xff] }
 0x1cc   :  { %v238_v42 = vpack.c.bf16 %v237_v41, %v236_v40  ;;  %v1430_v40 = vld [vmem:[%s1829_s7 + $0x80] sm:$0xff] }
 0x1ce   :  { %313 = vmatmul.bf16.vlgmr.msra.gmra.mxu3 %v238_v42  ;;  %v1467_v42 = vld [vmem:[%s1828_s6 + $0x2] ss:$0 sm:$0xff] }
 0x251   :  { %v314_v43 = vpop.f32.mrf.mxu3 }
 0x252   :  { %v315_v45 = vadd.f32 %v1464_v44, %v314_v43 }
 0x254   :  { %v319_v48 = vmax.f32 %v315_v45, 0.0 }
 0x259   :  { %v316_v46 = vpop.f32.mrf.mxu3 }
 0x25a   :  { %v317_v47 = vadd.f32 %v1464_v44, %v316_v46 }
 0x25c   :  { %v320_v49 = vmax.f32 %v317_v47, 0.0 }
 0x25e   :  { %v321_v51 = vpack.c.bf16 %v320_v49, %v319_v48  ;;  %v1445_v49 = vld [vmem:[%s1831_s9 + $0x38] sm:$0xff] }
 0x25f   :  { %770 = vmatpush.bf16.msra.mxu0 %v1445_v49 }
 0x260   :  { %329 = vmatpush.bf16.msra.mxu1 %v321_v51  ;;  %v1443_v51 = vld [vmem:[%s1831_s9 + $0x28] sm:$0xff] }
 0x263   :  { %1057 = vmatmul.msk.bf16.vlgmr.msra.gmra.mxu1 %vm137_vm0, %v1568_v16 }
 0x264   :  { %404 = vmatpush.bf16.msrb.mxu1 %v1413_v50  ;;  %v1444_v50 = vld [vmem:[%s1831_s9 + $0x30] sm:$0xff] }
 0x265   :  { %771 = vmatpush.bf16.msra.mxu0 %v1444_v50 }
 0x268   :  { %405 = vmatpush.bf16.msrb.mxu1 %v1412_v52  ;;  %v1442_v52 = vld [vmem:[%s1831_s9 + $0x20] sm:$0xff] }
 0x269   :  { %772 = vmatpush.bf16.msra.mxu0 %v1443_v51 }
 0x26c   :  { %406 = vmatpush.bf16.msrb.mxu1 %v1411_v53  ;;  %v1441_v53 = vld [vmem:[%s1831_s9 + $0x18] sm:$0xff] }
 0x26d   :  { %773 = vmatpush.bf16.msra.mxu0 %v1442_v52 }
 0x270   :  { %407 = vmatpush.bf16.msrb.mxu1 %v1410_v54 }
 0x271   :  { %774 = vmatpush.bf16.msra.mxu0 %v1441_v53 }
 0x274   :  { %408 = vmatpush.bf16.msrb.mxu1 %v1409_v55  ;;  %v1440_v55 = vld [vmem:[%s1831_s9 + $0x10] sm:$0xff] }
 0x275   :  { %775 = vmatpush.bf16.msra.mxu0 %v1440_v55 }
 0x278   :  { %409 = vmatpush.bf16.msrb.mxu1 %v1408_v56  ;;  %v1468_v56 = vld [vmem:[%s1830_s8 + $0x2] ss:$0 sm:$0xff] }
 0x27c   :  { %410 = vmatpush.bf16.msrb.mxu1 %v1407_v57  ;;  %v1439_v57 = vld [vmem:[%s1831_s9 + $0x8] sm:$0xff] }
 0x27d   :  { %776 = vmatpush.bf16.msra.mxu0 %v1439_v57 }
 0x280   :  { %411 = vmatpush.bf16.msrb.mxu1 %v1406_v58 }
 0x2e0   :  { %v331_v63 = vpop.f32.mrf.mxu1 }
 0x2e8   :  { %v333_v0 = vpop.f32.mrf.mxu1 }
 0x2e9   :  { %v336_v1 = vpack.c.bf16 %v333_v0, %v331_v63  ;;  %v1438_v63 = vld [vmem:[%s1831_s9] sm:$0xff]  ;;  %v1453_v0 = vld [vmem:[%s1831_s9 + $0x78] sm:$0xff] }
 0x2ea   :  { %777 = vmatpush.bf16.msra.mxu0 %v1438_v63  ;;  %852 = vmatpush.bf16.msra.mxu3 %v1453_v0 }
 0x2eb   :  { %412 = vmatmul.bf16.vlgmr.msrb.gmra.mxu1 %v336_v1  ;;  %v1452_v1 = vld [vmem:[%s1831_s9 + $0x70] sm:$0xff] }
 0x2ee   :  { %853 = vmatpush.bf16.msra.mxu3 %v1452_v1 }
 0x2f2   :  { %854 = vmatpush.bf16.msra.mxu3 %v1451_v2 }
 0x2f6   :  { %855 = vmatpush.bf16.msra.mxu3 %v1450_v3 }
 0x2fa   :  { %856 = vmatpush.bf16.msra.mxu3 %v1449_v4 }
 0x2fe   :  { %857 = vmatpush.bf16.msra.mxu3 %v1448_v5 }
 0x368   :  { %v413_v6 = vpop.f32.mrf.mxu1 }
 0x369   :  { %v414_v8 = vadd.f32 %v1465_v7, %v413_v6 }
 0x36b   :  { %v418_v11 = vmax.f32 %v414_v8, 0.0 }
 0x370   :  { %v415_v9 = vpop.f32.mrf.mxu1 }
 0x371   :  { %v416_v10 = vadd.f32 %v1465_v7, %v415_v9  ;;  %v1447_v9 = vld [vmem:[%s1831_s9 + $0x48] sm:$0xff] }
 0x372   :  { %858 = vmatpush.bf16.msra.mxu3 %v1447_v9 }
 0x373   :  { %v419_v12 = vmax.f32 %v416_v10, 0.0  ;;  %v1446_v10 = vld [vmem:[%s1831_s9 + $0x40] sm:$0xff] }
 0x375   :  { %v420_v13 = vpack.c.bf16 %v419_v12, %v418_v11  ;;  %v1461_v11 = vld [vmem:[%s1831_s9 + $0xb8] sm:$0xff]  ;;  %v1460_v12 = vld [vmem:[%s1831_s9 + $0xb0] sm:$0xff] }
 0x376   :  { %859 = vmatpush.bf16.msra.mxu3 %v1446_v10 }
 0x377   :  { %496 = vmatmul.bf16.vlgmr.msrb.gmra.mxu0 %v420_v13  ;;  %v1459_v13 = vld [vmem:[%s1831_s9 + $0xa8] sm:$0xff] }
 0x3f4   :  { %v497_v19 = vpop.f32.mrf.mxu0 }
 0x3f5   :  { %v498_v22 = vadd.f32 %v1466_v21, %v497_v19 }
 0x3f7   :  { %v502_v25 = vmax.f32 %v498_v22, 0.0 }
 0x3fc   :  { %v499_v23 = vpop.f32.mrf.mxu0 }
 0x3fd   :  { %v500_v24 = vadd.f32 %v1466_v21, %v499_v23 }
 0x3ff   :  { %v503_v26 = vmax.f32 %v500_v24, 0.0  ;;  %v1455_v24 = vld [vmem:[%s1831_s9 + $0x88] sm:$0xff] }
 0x401   :  { %v504_v27 = vpack.c.bf16 %v503_v26, %v502_v25  ;;  %v1454_v25 = vld [vmem:[%s1831_s9 + $0x80] sm:$0xff] }
 0x402   :  { %v1470_v26 = vld [vmem:[%s1833_s10 + $0x1] ss:$0 sm:$0xff] }
 0x403   :  { %512 = vmatpush.bf16.msra.mxu2 %v504_v27 }
 0x406   :  { %1154 = vmatmul.msk.bf16.vlgmr.msra.gmra.mxu2 %vm137_vm0, %v1568_v16  ;;  %v1436_v16 = vld [vmem:[%s1829_s7 + $0xb0] sm:$0xff] }
 0x407   :  { %671 = vmatpush.bf16.msrb.mxu2 %v1437_v31 }
 0x40b   :  { %672 = vmatpush.bf16.msrb.mxu2 %v1436_v16  ;;  %v1471_v16 = vld [vmem:[%s1833_s10 + $0x2] ss:$0 sm:$0xff] }
 0x40f   :  { %673 = vmatpush.bf16.msrb.mxu2 %v1435_v32 }
 0x413   :  { %674 = vmatpush.bf16.msrb.mxu2 %v1434_v33 }
 0x417   :  { %675 = vmatpush.bf16.msrb.mxu2 %v1433_v37 }
 0x41b   :  { %676 = vmatpush.bf16.msrb.mxu2 %v1432_v38 }
 0x41f   :  { %677 = vmatpush.bf16.msrb.mxu2 %v1431_v39 }
 0x423   :  { %678 = vmatpush.bf16.msrb.mxu2 %v1430_v40 }
 0x489   :  { %v514_v34 = vpop.f32.mrf.mxu2 }
 0x491   :  { %v516_v35 = vpop.f32.mrf.mxu2 }
 0x492   :  { %v519_v36 = vpack.c.bf16 %v516_v35, %v514_v34 }
 0x494   :  { %595 = vmatmul.bf16.vlgmr.msrb.gmra.mxu3 %v519_v36 }
 0x517   :  { %v596_v41 = vpop.f32.mrf.mxu3 }
 0x518   :  { %v597_v43 = vadd.f32 %v1467_v42, %v596_v41 }
 0x51a   :  { %v601_v46 = vmax.f32 %v597_v43, 0.0 }
 0x51f   :  { %v598_v44 = vpop.f32.mrf.mxu3 }
 0x520   :  { %v599_v45 = vadd.f32 %v1467_v42, %v598_v44 }
 0x522   :  { %v602_v47 = vmax.f32 %v599_v45, 0.0 }
 0x524   :  { %v603_v48 = vpack.c.bf16 %v602_v47, %v601_v46 }
 0x526   :  { %679 = vmatmul.bf16.vlgmr.msrb.gmra.mxu2 %v603_v48 }
 0x5a9   :  { %v680_v54 = vpop.f32.mrf.mxu2 }
 0x5aa   :  { %v681_v59 = vadd.f32 %v1468_v56, %v680_v54 }
 0x5b1   :  { %v682_v58 = vpop.f32.mrf.mxu2 }
 0x5b2   :  { %v683_v60 = vadd.f32 %v1468_v56, %v682_v58 }
 0x5b4   :  { %v686_v61 = vpack.c.bf16 %v683_v60, %v681_v59 }
 0x5b6   :  { %697 = vmatpush.bf16.msra.mxu1 %v686_v61 }
 0x5b9   :  { %1251 = vmatmul.msk.bf16.vlgmr.msra.gmra.mxu1 %vm137_vm0, %v685_v62 }
 0x5ba   :  { %934 = vmatpush.bf16.msrb.mxu1 %v1461_v11 }
 0x5be   :  { %935 = vmatpush.bf16.msrb.mxu1 %v1460_v12 }
 0x5c2   :  { %936 = vmatpush.bf16.msrb.mxu1 %v1459_v13 }
 0x5c6   :  { %937 = vmatpush.bf16.msrb.mxu1 %v1458_v14 }
 0x5ca   :  { %938 = vmatpush.bf16.msrb.mxu1 %v1457_v15 }
 0x5ce   :  { %939 = vmatpush.bf16.msrb.mxu1 %v1456_v17 }
 0x5d2   :  { %940 = vmatpush.bf16.msrb.mxu1 %v1455_v24 }
 0x5d6   :  { %941 = vmatpush.bf16.msrb.mxu1 %v1454_v25 }
 0x636   :  { %v699_v6 = vpop.f32.mrf.mxu1 }
 0x637   :  { %v703_v7 = vpack.c.bf16 %v699_v6, %v699_v6 }
 0x639   :  { %778 = vmatmul.bf16.vlgmr.msra.gmra.mxu0 %v703_v7 }
 0x63e   :  { %v701_v8 = vpop.f32.mrf.mxu1 }
 0x6b6   :  { %v779_v19 = vpop.f32.mrf.mxu0 }
 0x6b7   :  { %v780_v20 = vadd.f32 %v1469_v18, %v779_v19 }
 0x6b9   :  { %v783_v21 = vmax.f32 %v780_v20, 0.0 }
 0x6bb   :  { %v784_v22 = vpack.c.bf16 %v783_v21, %v783_v21 }
 0x6bd   :  { %860 = vmatmul.bf16.vlgmr.msra.gmra.mxu3 %v784_v22 }
 0x6be   :  { %v781_v23 = vpop.f32.mrf.mxu0 }
 0x740   :  { %v861_v27 = vpop.f32.mrf.mxu3 }
 0x741   :  { %v862_v28 = vadd.f32 %v1470_v26, %v861_v27 }
 0x743   :  { %v865_v29 = vmax.f32 %v862_v28, 0.0 }
 0x745   :  { %v866_v30 = vpack.c.bf16 %v865_v29, %v865_v29 }
 0x747   :  { %942 = vmatmul.bf16.vlgmr.msrb.gmra.mxu1 %v866_v30 }
 0x748   :  { %v863_v31 = vpop.f32.mrf.mxu3 }
 0x7c4   :  { %v943_v32 = vpop.f32.mrf.mxu1 }
 0x7c5   :  { %v944_v33 = vadd.f32 %v1471_v16, %v943_v32 }
 0x7c7   :  { %947 = vst [vmem:[%s1834_s11] sm:$0xff] %v944_v33 }
 0x7cc   :  { %v945_v34 = vpop.f32.mrf.mxu1 }

</bundles_post_ra>
